<compile_context>
chip_gen: v5e
topology: v5e:2x2
jax: 0.10.0
libtpu: 0.0.40
codegen_flags: <defaults>
</compile_context>

<pallas_src>
import functools
import math

import jax
import jax.numpy as jnp
from jax import lax
from jax.experimental import pallas as pl
from jax.experimental.pallas import tpu as pltpu

_VMEM_LIMIT = 64 * 1024 * 1024  # cap; actual usage is far below this.


def _pick_tile(n, prefs=(256, 128)):
    for p in prefs:
        if n % p == 0:
            return p
    return n   # TODO(synk): pad + mask tail tiles when T is not a multiple of 128.


# --------------------------- linear projection -------------------------------

def _linear_kernel(x_ref, w_ref, b_ref, o_ref):
    # bf16 MXU operands, f32 accumulation; bias added in f32.
    o_ref[...] = (jnp.dot(x_ref[...].astype(jnp.bfloat16), w_ref[...],
                          preferred_element_type=jnp.float32)
                  + b_ref[...]).astype(o_ref.dtype)


def linear(x, w, b, *, out_dtype=jnp.float32, block_m=512):
    """x: (M, Din), w: (Din, Dout) f32, b: (1, Dout) f32 -> (M, Dout) out_dtype."""
    M, Din = x.shape
    Dout = w.shape[1]
    bm = min(block_m, M)
    w_bf = w.astype(jnp.bfloat16)          # weight DMA'd once per call, half width
    return pl.pallas_call(
        _linear_kernel,
        grid=(pl.cdiv(M, bm),),
        out_shape=jax.ShapeDtypeStruct((M, Dout), out_dtype),
        in_specs=[
            pl.BlockSpec((bm, Din), lambda i: (i, 0)),
            pl.BlockSpec((Din, Dout), lambda i: (0, 0)),
            pl.BlockSpec((1, Dout), lambda i: (0, 0)),
        ],
        out_specs=pl.BlockSpec((bm, Dout), lambda i: (i, 0)),
        compiler_params=pltpu.CompilerParams(
            dimension_semantics=("parallel",),
            vmem_limit_bytes=_VMEM_LIMIT),
    )(x, w_bf, b)


# --------------------------- primal branch kernel ----------------------------

def _primal_kernel(qk_ref, we_ref, wr_ref, cwe_ref, cwr_ref, cb_ref,
                   o_ref, carry_ref, *, h, dk):
    tq = qk_ref.shape[1]
    n_attn = h * dk
    ti = pl.program_id(1)

    @pl.when(ti == 0)
    def _():
        carry_ref[...] = jnp.zeros_like(carry_ref)

    qk_bf = qk_ref[0]                                     # (tq, 2*n_attn) bf16

    # Lower-triangular ones tile generated in-kernel from iota: no O(T^2) HBM
    # operand, no resident (T, T) VMEM block.
    row = lax.broadcasted_iota(jnp.int32, (tq, tq), 0)
    col = lax.broadcasted_iota(jnp.int32, (tq, tq), 1)
    tri = (col <= row).astype(jnp.bfloat16)

    # Blocked prefix sum: one MXU pass for the within-tile cumsum, plus the
    # carry (sum of all previous tiles' rows), divided by the global row count.
    within = jnp.dot(tri, qk_bf, preferred_element_type=jnp.float32)
    csum = within + carry_ref[...]
    rows = (lax.broadcasted_iota(jnp.int32, (tq, 1), 0)
            + ti * tq + 1).astype(jnp.float32)
    cmean = csum / rows                                   # cumulative mean (f32)

    carry_ref[...] += jnp.sum(qk_bf.astype(jnp.float32), axis=0, keepdims=True)

    # feature_map: per-head L2 normalize in f32 (XLU reduction + EUP rsqrt; no
    # bf16 ones-matmul on the MXU).
    def _fmap(x):
        parts = []
        for hh in range(h):
            xh = x[:, hh * dk:(hh + 1) * dk]
            ss = jnp.sum(xh * xh, axis=-1, keepdims=True)
            parts.append(xh * lax.rsqrt(jnp.maximum(ss, 1e-24)))
        return jnp.concatenate(parts, axis=-1)

    qn = _fmap(cmean[:, :n_attn]).astype(jnp.bfloat16)
    kn = _fmap(cmean[:, n_attn:]).astype(jnp.bfloat16)

    # escore / rscore for all heads at once via block-diagonal We / Wr.
    e = jnp.dot(qn, we_ref[...], preferred_element_type=jnp.float32)    # (tq, h*r)
    rs = jnp.dot(kn, wr_ref[...], preferred_element_type=jnp.float32)   # (tq, h*r)

    # concate_weight split into its escore/rscore halves (avoids an extra
    # in-kernel concat before the matmul).
    out = (jnp.dot(e.astype(jnp.bfloat16), cwe_ref[...],
                   preferred_element_type=jnp.float32)
           + jnp.dot(rs.astype(jnp.bfloat16), cwr_ref[...],
                     preferred_element_type=jnp.float32)
           + cb_ref[...])                                               # (tq, n_attn)

    # Fused lane-dense output slab: [x | escore | rscore], one store.
    o_ref[0] = jnp.concatenate([out, e, rs], axis=-1).astype(o_ref.dtype)


def _primal_pallas(qk3, we_bd, wr_bd, cwe_bd, cwr_bd, cb_t, *, h, dk, tq):
    B, T, C = qk3.shape
    n_attn = h * dk
    hr = we_bd.shape[1]
    const = lambda b, t: (0, 0)
    kern = functools.partial(_primal_kernel, h=h, dk=dk)
    # TODO(synk): constant-index operands could use pipeline_mode=pl.Buffered(1)
    # to drop their double buffer (v7x VMEM headroom); kept default for safety.
    # TODO(synk): gate pltpu.CORE_PARALLEL on the batch axis for v7x (2 TCs).
    return pl.pallas_call(
        kern,
        grid=(B, T // tq),
        out_shape=jax.ShapeDtypeStruct((B, T, n_attn + 2 * hr), jnp.float32),
        in_specs=[
            pl.BlockSpec((1, tq, C), lambda b, t: (b, t, 0)),
            pl.BlockSpec((n_attn, hr), const),
            pl.BlockSpec((n_attn, hr), const),
            pl.BlockSpec((hr, n_attn), const),
            pl.BlockSpec((hr, n_attn), const),
            pl.BlockSpec((1, n_attn), const),
        ],
        out_specs=pl.BlockSpec((1, tq, n_attn + 2 * hr), lambda b, t: (b, t, 0)),
        scratch_shapes=[pltpu.VMEM((1, C), jnp.float32)],   # running row-sum carry
        compiler_params=pltpu.CompilerParams(
            dimension_semantics=("parallel", "arbitrary"),
            vmem_limit_bytes=_VMEM_LIMIT),
    )(qk3, we_bd, wr_bd, cwe_bd, cwr_bd, cb_t)


# --------------------------- softmax branch (flash) --------------------------

def _flash_kernel(q_ref, k_ref, v_ref, mask_ref, o_ref, m_sc, l_sc, acc_sc, *, dk):
    ki = pl.program_id(2)

    @pl.when(ki == 0)
    def _():
        m_sc[...] = jnp.full_like(m_sc, -jnp.inf)
        l_sc[...] = jnp.zeros_like(l_sc)
        acc_sc[...] = jnp.zeros_like(acc_sc)

    q = q_ref[0]                                   # (tq, dk) bf16
    k = k_ref[0]                                   # (tk, dk) bf16
    v = v_ref[0]                                   # (tk, dk) bf16
    masked = mask_ref[0] == 0                      # (1, tk); broadcasts vs (tq, tk)

    s = lax.dot_general(q, k, (((1,), (1,)), ((), ())),
                        preferred_element_type=jnp.float32) * (1.0 / math.sqrt(dk))
    s = jnp.where(masked, jnp.finfo(jnp.float32).min, s)

    m_prev = m_sc[...]
    m_new = jnp.maximum(m_prev, jnp.max(s, axis=-1, keepdims=True))
    alpha = jnp.exp(m_prev - m_new)
    p = jnp.exp(s - m_new)
    p = jnp.where(masked, 0.0, p)                  # matches masked_fill(attn, 0.0)
    l_sc[...] = alpha * l_sc[...] + jnp.sum(p, axis=-1, keepdims=True)
    acc_sc[...] = alpha * acc_sc[...] + jnp.dot(p.astype(jnp.bfloat16), v,
                                                preferred_element_type=jnp.float32)
    m_sc[...] = m_new

    @pl.when(ki == pl.num_programs(2) - 1)
    def _():
        l = l_sc[...]
        l = jnp.where(l == 0.0, 1.0, l)            # fully-masked rows -> 0 output
        o_ref[0] = (acc_sc[...] * pl.reciprocal(l, approx=True)).astype(o_ref.dtype)


def _flash_pallas(q4, k4, v4, mask3, *, h, tq, tk):
    BH, T, dk = q4.shape
    kern = functools.partial(_flash_kernel, dk=dk)
    # TODO(synk): gate pltpu.CORE_PARALLEL on the (B*h) axis for v7x (2 TCs).
    return pl.pallas_call(
        kern,
        grid=(BH, T // tq, T // tk),
        out_shape=jax.ShapeDtypeStruct((BH, T, dk), jnp.bfloat16),
        in_specs=[
            pl.BlockSpec((1, tq, dk), lambda g, qi, ki: (g, qi, 0)),
            pl.BlockSpec((1, tk, dk), lambda g, qi, ki: (g, ki, 0)),
            pl.BlockSpec((1, tk, dk), lambda g, qi, ki: (g, ki, 0)),
            pl.BlockSpec((1, 1, tk), lambda g, qi, ki: (g // h, 0, ki)),
        ],
        out_specs=pl.BlockSpec((1, tq, dk), lambda g, qi, ki: (g, qi, 0)),
        scratch_shapes=[pltpu.VMEM((tq, 1), jnp.float32),     # running max m
                        pltpu.VMEM((tq, 1), jnp.float32),     # running sum l
                        pltpu.VMEM((tq, dk), jnp.float32)],   # output accumulator
        compiler_params=pltpu.CompilerParams(
            dimension_semantics=("parallel", "parallel", "arbitrary"),
            vmem_limit_bytes=_VMEM_LIMIT),
    )(q4, k4, v4, mask3)


# --------------------------- module wrapper ---------------------------------

def init_params(key, n_head, n_feat, low_rank, n_attn):
    assert n_attn % n_head == 0
    d_k = n_attn // n_head
    keys = jax.random.split(key, 8)
    orth = jax.nn.initializers.orthogonal()
    We = orth(keys[0], (n_head, d_k, low_rank), jnp.float32)
    Wr = orth(keys[1], (n_head, d_k, low_rank), jnp.float32)
    Lambda = jax.random.uniform(keys[2], (n_head, low_rank), jnp.float32)

    def lin(k, fi, fo):
        kw, kb = jax.random.split(k)
        bound = 1.0 / math.sqrt(fi)
        return (jax.random.uniform(kw, (fi, fo), jnp.float32, -bound, bound),
                jax.random.uniform(kb, (1, fo), jnp.float32, -bound, bound))

    cw, cb = lin(keys[3], 2 * low_rank, d_k)
    wq, bq = lin(keys[4], n_feat, n_attn)
    wk, bk = lin(keys[5], n_feat, n_attn)
    wv, bv = lin(keys[6], n_feat, n_attn)
    wo, bo = lin(keys[7], n_attn, n_feat)
    return dict(h=n_head, d_k=d_k, We=We, Wr=Wr, Lambda=Lambda, cw=cw, cb=cb,
                wq=wq, bq=bq, wk=wk, bk=bk, wv=wv, bv=bv, wo=wo, bo=bo)


def _pack_primal_weights(params):
    """Pack per-head weights into block-diagonal MXU operands (bf16).
    TODO(synk): hoist into a one-time prepare step keyed on params."""
    h = params["h"]
    We, Wr, cw, cb = params["We"], params["Wr"], params["cw"], params["cb"]
    r = We.shape[-1]
    bd = jax.scipy.linalg.block_diag
    we_bd = bd(*[We[i] for i in range(h)]).astype(jnp.bfloat16)    # (n_attn, h*r)
    wr_bd = bd(*[Wr[i] for i in range(h)]).astype(jnp.bfloat16)    # (n_attn, h*r)
    cwe_bd = bd(*([cw[:r]] * h)).astype(jnp.bfloat16)              # (h*r, n_attn)
    cwr_bd = bd(*([cw[r:]] * h)).astype(jnp.bfloat16)              # (h*r, n_attn)
    cb_t = jnp.tile(cb, (1, h)).astype(jnp.float32)                # (1, n_attn)
    return we_bd, wr_bd, cwe_bd, cwr_bd, cb_t


def _split_heads(x, h, dk):
    B, T, _ = x.shape
    return x.reshape(B, T, h, dk).transpose(0, 2, 1, 3).reshape(B * h, T, dk)


def _merge_heads(x, B, h):
    _, T, dk = x.shape
    return x.reshape(B, h, T, dk).transpose(0, 2, 1, 3).reshape(B, T, h * dk)


def primal_attention_forward(params, query, key, value, p_layer, mask=None):
    B, T, n_feat = query.shape
    h, dk = params["h"], params["d_k"]
    r = params["We"].shape[-1]
    n_attn = h * dk
    hr = h * r

    # Projections emitted in bf16 (they are bf16 MXU operands downstream anyway).
    q3 = linear(query.reshape(B * T, n_feat), params["wq"], params["bq"],
                out_dtype=jnp.bfloat16).reshape(B, T, n_attn)
    k3 = linear(key.reshape(B * T, n_feat), params["wk"], params["bk"],
                out_dtype=jnp.bfloat16).reshape(B, T, n_attn)

    if p_layer:
        we_bd, wr_bd, cwe_bd, cwr_bd, cb_t = _pack_primal_weights(params)
        # Pre-concatenate [q | k] once in the wrapper; one input slab per step.
        qk3 = jnp.concatenate([q3, k3], axis=-1)                  # (B, T, 2*n_attn)
        tq = _pick_tile(T, prefs=(512, 256, 128))
        slab = _primal_pallas(qk3, we_bd, wr_bd, cwe_bd, cwr_bd, cb_t,
                              h=h, dk=dk, tq=tq)                  # (B, T, n_attn+2hr)
        x = slab[..., :n_attn]
        escore = slab[..., n_attn:n_attn + hr].reshape(B, T, h, r).transpose(0, 2, 1, 3)
        rscore = slab[..., n_attn + hr:].reshape(B, T, h, r).transpose(0, 2, 1, 3)
    else:
        v3 = linear(value.reshape(B * T, n_feat), params["wv"], params["bv"],
                    out_dtype=jnp.bfloat16).reshape(B, T, n_attn)
        if mask is None:
            mask3 = jnp.ones((B, 1, T), jnp.int32)
        else:
            mask3 = mask.reshape(B, 1, T).astype(jnp.int32)
        tqk = _pick_tile(T, prefs=(256, 128))
        q4 = _split_heads(q3, h, dk)
        k4 = _split_heads(k3, h, dk)
        v4 = _split_heads(v3, h, dk)
        x4 = _flash_pallas(q4, k4, v4, mask3, h=h, tq=tqk, tk=tqk)  # (B*h, T, dk)
        x = _merge_heads(x4, B, h)
        # TODO(synk): nn.Dropout is identity here (inference / p=0); stochastic dropout not implemented.
        escore, rscore = 0, 0

    out = linear(x.reshape(B * T, n_attn), params["wo"], params["bo"],
                 out_dtype=jnp.float32).reshape(B, T, n_feat)
    return out, [escore, rscore, params["We"], params["Wr"], params["Lambda"]]


# --------------------------- pure-JAX reference ------------------------------

def ref_forward(params, query, key, value, p_layer, mask=None):
    B, T, _ = query.shape
    h, dk = params["h"], params["d_k"]
    q = (query @ params["wq"] + params["bq"]).reshape(B, T, h, dk).transpose(0, 2, 1, 3)
    k = (key @ params["wk"] + params["bk"]).reshape(B, T, h, dk).transpose(0, 2, 1, 3)
    if p_layer:
        normal = jnp.arange(1, T + 1, dtype=jnp.float32)[None, None, :, None]
        q = jnp.cumsum(q, axis=2) / normal
        k = jnp.cumsum(k, axis=2) / normal
        q = q / jnp.maximum(jnp.linalg.norm(q, axis=-1, keepdims=True), 1e-12)
        k = k / jnp.maximum(jnp.linalg.norm(k, axis=-1, keepdims=True), 1e-12)
        e = jnp.einsum('bhnd,hde->bhne', q, params["We"])
        r = jnp.einsum('bhnd,hde->bhne', k, params["Wr"])
        s = jnp.concatenate([e, r], axis=-1)
        x = (jnp.einsum('bhne,ed->bhnd', s, params["cw"]) + params["cb"])
        x = x.transpose(0, 2, 1, 3).reshape(B, T, h * dk)
    else:
        v = (value @ params["wv"] + params["bv"]).reshape(B, T, h, dk).transpose(0, 2, 1, 3)
        scores = jnp.einsum('bhqd,bhkd->bhqk', q, k) / math.sqrt(dk)
        if mask is not None:
            m = (mask.reshape(B, 1, 1, T) == 0)
            scores = jnp.where(m, jnp.finfo(jnp.float32).min, scores)
            attn = jax.nn.softmax(scores, axis=-1)
            attn = jnp.where(m, 0.0, attn)
        else:
            attn = jax.nn.softmax(scores, axis=-1)
        x = jnp.einsum('bhqk,bhkd->bhqd', attn, v).transpose(0, 2, 1, 3).reshape(B, T, h * dk)
    return x @ params["wo"] + params["bo"]


# --------------------------------- main --------------------------------------

if __name__ == "__main__":
    n_head, n_feat, low_rank, n_attn, dropout_rate = 2, 32, 4, 16, 0.0
    B, T = 2, 8

    params = init_params(jax.random.PRNGKey(0), n_head, n_feat, low_rank, n_attn)
    kq, kk, kv = jax.random.split(jax.random.PRNGKey(1), 3)
    query = jax.random.normal(kq, (B, T, n_feat), jnp.float32)
    key = jax.random.normal(kk, (B, T, n_feat), jnp.float32)
    value = jax.random.normal(kv, (B, T, n_feat), jnp.float32)
    mask = jnp.concatenate(
        [jnp.ones((B, 1, T - 2), jnp.int32), jnp.zeros((B, 1, 2), jnp.int32)],
        axis=-1)

    # primal branch (p_layer=True) and standard softmax attention branch
    out_p, aux_p = primal_attention_forward(params, query, key, value, True, None)
    out_s, aux_s = primal_attention_forward(params, query, key, value, False, mask)
    jax.block_until_ready((out_p, out_s))

    ref_p = ref_forward(params, query, key, value, True, None)
    ref_s = ref_forward(params, query, key, value, False, mask)
    # tolerance widened slightly vs pure-f32 reference: MXU operands and the
    # inter-kernel Q/K/V handoff are bf16 (all accumulation / softmax /
    # normalize math stays f32; softmax denominator uses approx reciprocal).
    assert jnp.allclose(out_p, ref_p, atol=2e-2, rtol=2e-2)
    assert jnp.allclose(out_s, ref_s, atol=2e-2, rtol=2e-2)

    print("KERNEL_OK")
</pallas_src>

<mosaic_0001>
module attributes {stable_mosaic.version = 11 : i64} {
  func.func @_linear_kernel(%arg0: i32, %arg1: memref<16x32xf32, #tpu.memory_space<vmem>>, %arg2: memref<32x16xbf16, #tpu.memory_space<vmem>>, %arg3: memref<1x16xf32, #tpu.memory_space<vmem>>, %arg4: memref<16x16xbf16, #tpu.memory_space<vmem>>) attributes {dimension_semantics = [#tpu.dimension_semantics<parallel>], iteration_bounds = array<i64: 1>, scalar_prefetch = 0 : i64, scratch_operands = 0 : i64, tpu.core_type = #tpu.core_type<tc>, window_params = [{transform_indices = @transform_0, window_bounds = array<i64: 16, 32>}, {pipeline_mode = #tpu.pipeline_mode<synchronous>, transform_indices = @transform_1, window_bounds = array<i64: 32, 16>}, {pipeline_mode = #tpu.pipeline_mode<synchronous>, transform_indices = @transform_2, window_bounds = array<i64: 1, 16>}, {transform_indices = @transform_3, window_bounds = array<i64: 16, 16>}]} {
    %c0 = arith.constant 0 : index
    %c0_0 = arith.constant 0 : index
    %0 = vector.load %arg1[%c0, %c0_0] : memref<16x32xf32, #tpu.memory_space<vmem>>, vector<16x32xf32>
    %1 = arith.truncf %0 : vector<16x32xf32> to vector<16x32xbf16>
    %c0_1 = arith.constant 0 : index
    %c0_2 = arith.constant 0 : index
    %2 = vector.load %arg2[%c0_1, %c0_2] : memref<32x16xbf16, #tpu.memory_space<vmem>>, vector<32x16xbf16>
    %cst = arith.constant dense<0.000000e+00> : vector<16x16xf32>
    %3 = tpu.matmul %1, %2, %cst {dimension_numbers = #tpu.dot_dimension_numbers<[1], [0], [0], [1], [0, 0, 1, 1], [], []>} : vector<16x32xbf16>, vector<32x16xbf16>, vector<16x16xf32> -> vector<16x16xf32>
    %c0_3 = arith.constant 0 : index
    %c0_4 = arith.constant 0 : index
    %4 = vector.load %arg3[%c0_3, %c0_4] : memref<1x16xf32, #tpu.memory_space<vmem>>, vector<1x16xf32>
    %5 = vector.broadcast %4 : vector<1x16xf32> to vector<16x16xf32>
    %6 = arith.addf %3, %5 : vector<16x16xf32>
    %7 = arith.truncf %6 : vector<16x16xf32> to vector<16x16xbf16>
    %c0_5 = arith.constant 0 : index
    %c0_6 = arith.constant 0 : index
    %8 = vector.load %arg4[%c0_5, %c0_6] : memref<16x16xbf16, #tpu.memory_space<vmem>>, vector<16x16xbf16>
    tpu.vector_store %arg4[%c0_5, %c0_6], %7 {strides = array<i32>} : memref<16x16xbf16, #tpu.memory_space<vmem>>, vector<16x16xbf16>,
    return
  }
  func.func @transform_0(%arg0: i32) -> (i32, i32) {
    %c0_i32 = arith.constant 0 : i32
    %c0_i32_0 = arith.constant 0 : i32
    return %arg0, %c0_i32 : i32, i32
  }
  func.func @transform_1(%arg0: i32) -> (i32, i32) {
    %c0_i32 = arith.constant 0 : i32
    %c0_i32_0 = arith.constant 0 : i32
    %c0_i32_1 = arith.constant 0 : i32
    return %c0_i32, %c0_i32_0 : i32, i32
  }
  func.func @transform_2(%arg0: i32) -> (i32, i32) {
    %c0_i32 = arith.constant 0 : i32
    %c0_i32_0 = arith.constant 0 : i32
    %c0_i32_1 = arith.constant 0 : i32
    return %c0_i32, %c0_i32_0 : i32, i32
  }
  func.func @transform_3(%arg0: i32) -> (i32, i32) {
    %c0_i32 = arith.constant 0 : i32
    %c0_i32_0 = arith.constant 0 : i32
    return %arg0, %c0_i32 : i32, i32
  }
}

</mosaic_0001>

<bundles_post_ra>
// kernel: tpu_custom_call.1
= control target key start
LH: loop header
LB: loop body
LE: loop exit
PB: predicated region body
PF: predicated region fallthrough
CT: control target
= control target key end

     0   :  { %s162_s0 = inlined_call_operand.vmem [shape: f32[16,32], index: 0, kind: input, shape index: {}]   ;;  %s163_s1 = inlined_call_operand.vmem [shape: bf16[32,16], index: 1, kind: input, shape index: {}]   ;;  %s164_s2 = inlined_call_operand.vmem [shape: f32[1,16], index: 2, kind: input, shape index: {}]   ;;  %s165_s3 = inlined_call_operand.hbm [shape: bf16[16,16], index: 3, kind: output, shape index: {}]  }
   0x1   :  { %v90_v0 = vld [vmem:[%s163_s1 + $0x8] sm:$0xff]  ;;  %v89_v1 = vld [vmem:[%s163_s1] sm:$0xff] }
   0x2   :  { %49 = vmatpush.bf16.msra.mxu0 %v90_v0  ;;  %v16_v2 = vld [vmem:[%s162_s0] sm:$0xff]  ;;  %v17_v3 = vld [vmem:[%s162_s0 + $0x8] sm:$0xff] }
   0x3   :  { %8 = vsyncpa [#allocation3], 0  ;;  %v18_v4 = vpack.c.bf16 %v17_v3, %v16_v2  ;;  %vm39_vm0 = vcmask 261120   ;;  %v94_v5 = vld [vmem:[%s164_s2] ss:$0 sm:$0xff]  ;;  %vm59_vm1 = vcmask 125952  }
   0x4   :  { %s121_s1 = smov [#allocation2]   ;;  %s68_s0 = sshll.u32 %s165_s3, 4  ;;  %s69_s0 = int_to_ptr.hbm [resolvable:$true] %s68_s0 }
   0x5   :  { %s66_s22 = sshll.u32 %s121_s1, 4  ;;  %s122_s25 = smov 64   ;;  %s67_s22 = int_to_ptr.vmem [resolvable:$true] %s66_s22 }
   0x6   :  { %50 = vmatpush.bf16.msra.mxu0 %v89_v1  ;;  %s123_s26 = smov 4  }
   0x9   :  { %88 = vmatmul.msk.bf16.vlgmr.msra.gmra.mxu0 %vm39_vm0, %v18_v4 }
  0x86   :  { %v52_v6 = vpop.f32.mrf.mxu0 }
  0x87   :  { %v53_v7 = vadd.f32 %v94_v5, %v52_v6 }
  0x89   :  { %v57_v8 = vpack.c.bf16 %v53_v7, %v53_v7 }
  0x8b   :  { %60 = vst.msk [vmem:[#allocation2] sm:$0xf] %vm59_vm1, %v57_v8 }
  0x8e   :  { %v54_v9 = vpop.f32.mrf.mxu0 }
  0x8f   :  { %v55_v10 = vadd.f32 %v94_v5, %v54_v9 }
  0x91   :  { %v58_v11 = vpack.c.bf16 %v55_v10, %v55_v10 }
  0x93   :  { %61 = vst.msk [vmem:[#allocation2 + $0x4] sm:$0xf] %vm59_vm1, %v58_v11 }
  0x94   :  { %74 = dma.vmem_to_hbm [thread:$0]  %s67_s22, 128, %s69_s0, [#allocation3], %s122_s25, %s122_s25, %s123_s26  }
  0x95   :  { %119 = dma.done.wait [#allocation3], 128  }
  0x96   :  { %120 = vsyncadd [#allocation3], 4294967168 }
  0x97   :  { %79 = vsyncpa [#allocation3], 1 }

</bundles_post_ra>
